<compile_context>
chip_gen: v5e
topology: v5e:2x2
jax: 0.10.0
libtpu: 0.0.40
codegen_flags: <defaults>
</compile_context>

<pallas_src>
import jax
import jax.numpy as jnp
from jax.experimental import pallas as pl
from jax.experimental.pallas import tpu as pltpu


def _linear_kernel(x_ref, w_ref, b_ref, o_ref):
    # x_ref: (TB, F) VMEM   w_ref: (1, F) VMEM   b_ref: (1,) SMEM   o_ref: (TB, 1)
    x = x_ref[...].astype(jnp.float32)
    w = w_ref[...].astype(jnp.float32)          # broadcasts over rows
    # VPU elementwise multiply + XLU lane reduce; accumulate in f32.
    acc = jnp.sum(x * w, axis=-1, keepdims=True)
    o_ref[...] = (acc + b_ref[0]).astype(o_ref.dtype)


def _pick_tile_batch(batch, n_feature, itemsize):
    """Largest batch tile that keeps double-buffered x tiles comfortably
    inside the default scoped-VMEM limit on every generation
    (16 MiB v5e / 32 MiB v6e, v7x): ~4 MiB per x buffer."""
    per_buffer_budget = 4 * 1024 * 1024
    tb = per_buffer_budget // max(1, n_feature * itemsize)
    tb = max(8, min(2048, (tb // 8) * 8))       # multiple of 8 sublanes
    return min(batch, tb)                       # == batch (full dim) if small


def linear_net_forward(x, weight, bias, *, tile_batch=None):
    """Pallas equivalent of LinearNet.forward.

    Args:
      x:      (batch, n_feature) float32
      weight: (1, n_feature)     float32  (PyTorch nn.Linear layout, NOT transposed)
      bias:   (1,)               float32
      tile_batch: optional explicit batch tile (multiple of 8, or == batch).
    Returns:
      y:      (batch, 1)         float32
    """
    batch, n_feature = x.shape
    b = jnp.asarray(bias, dtype=x.dtype).reshape(1)   # (1,) scalar in SMEM

    tb = tile_batch if tile_batch is not None else _pick_tile_batch(
        batch, n_feature, jnp.dtype(x.dtype).itemsize)
    tb = min(tb, batch)
    grid = (pl.cdiv(batch, tb),)

    return pl.pallas_call(
        _linear_kernel,
        out_shape=jax.ShapeDtypeStruct((batch, 1), x.dtype),
        grid=grid,
        in_specs=[
            # x: batch-tiled, pipelined (double-buffered) HBM->VMEM streams.
            pl.BlockSpec((tb, n_feature), lambda i: (i, 0)),
            # weight: single block, same index every step -> stays resident.
            pl.BlockSpec((1, n_feature), lambda i: (0, 0)),
            # bias: whole (1,) array in SMEM, no per-step DMA.
            pl.BlockSpec(memory_space=pltpu.MemorySpace.SMEM),
        ],
        out_specs=pl.BlockSpec((tb, 1), lambda i: (i, 0)),
        compiler_params=pltpu.CompilerParams(
            # Batch tiles are independent -> shard across v7x's 2 TensorCores.
            dimension_semantics=("parallel",),
        ),
    )(x, weight, b)


if __name__ == "__main__":
    key = jax.random.PRNGKey(0)
    kx, kw, kb, kx2 = jax.random.split(key, 4)

    # ---- Small primary test (matches the module: nn.Linear(n_feature, 1)) ----
    batch = 8
    n_feature = 32

    x = jax.random.normal(kx, (batch, n_feature), dtype=jnp.float32)
    bound = 1.0 / (n_feature ** 0.5)
    weight = jax.random.uniform(kw, (1, n_feature), dtype=jnp.float32,
                                minval=-bound, maxval=bound)
    bias = jax.random.uniform(kb, (1,), dtype=jnp.float32,
                              minval=-bound, maxval=bound)

    y = linear_net_forward(x, weight, bias)
    jax.block_until_ready(y)
    y_ref = x @ weight.T + bias
    assert y.shape == (batch, 1)
    assert jnp.allclose(y, y_ref, atol=1e-5, rtol=1e-5)

    # ---- Multi-tile check: exercises the grid + a partial trailing block ----
    batch2 = 272          # 3 grid steps at tile_batch=128 (last block partial)
    x2 = jax.random.normal(kx2, (batch2, n_feature), dtype=jnp.float32)
    y2 = linear_net_forward(x2, weight, bias, tile_batch=128)
    jax.block_until_ready(y2)
    y2_ref = x2 @ weight.T + bias
    assert y2.shape == (batch2, 1)
    assert jnp.allclose(y2, y2_ref, atol=1e-5, rtol=1e-5)

    print("KERNEL_OK")
</pallas_src>

<mosaic_0001>
module attributes {stable_mosaic.version = 11 : i64} {
  func.func @_linear_kernel(%arg0: i32, %arg1: memref<8x32xf32, #tpu.memory_space<vmem>>, %arg2: memref<1x32xf32, #tpu.memory_space<vmem>>, %arg3: memref<1xf32, #tpu.memory_space<smem>>, %arg4: memref<8x1xf32, #tpu.memory_space<vmem>>) attributes {dimension_semantics = [#tpu.dimension_semantics<parallel>], iteration_bounds = array<i64: 1>, scalar_prefetch = 0 : i64, scratch_operands = 0 : i64, tpu.core_type = #tpu.core_type<tc>, window_params = [{transform_indices = @transform_0, window_bounds = array<i64: 8, 32>}, {pipeline_mode = #tpu.pipeline_mode<synchronous>, transform_indices = @transform_1, window_bounds = array<i64: 1, 32>}, {transform_indices = @transform_2, window_bounds = array<i64: 1>}, {transform_indices = @transform_3, window_bounds = array<i64: 8, 1>}]} {
    %c0 = arith.constant 0 : index
    %c0_0 = arith.constant 0 : index
    %0 = vector.load %arg1[%c0, %c0_0] : memref<8x32xf32, #tpu.memory_space<vmem>>, vector<8x32xf32>
    %c0_1 = arith.constant 0 : index
    %c0_2 = arith.constant 0 : index
    %1 = vector.load %arg2[%c0_1, %c0_2] : memref<1x32xf32, #tpu.memory_space<vmem>>, vector<1x32xf32>
    %2 = vector.broadcast %1 : vector<1x32xf32> to vector<8x32xf32>
    %3 = arith.mulf %0, %2 : vector<8x32xf32>
    %cst = arith.constant dense<0.000000e+00> : vector<8xf32>
    %4 = vector.multi_reduction <add>, %3, %cst [1] : vector<8x32xf32> to vector<8xf32>
    %5 = vector.shape_cast %4 : vector<8xf32> to vector<8x1xf32>
    %c0_3 = arith.constant 0 : index
    %6 = memref.load %arg3[%c0_3] : memref<1xf32, #tpu.memory_space<smem>>
    %7 = vector.broadcast %6 : f32 to vector<8x1xf32>
    %8 = arith.addf %5, %7 : vector<8x1xf32>
    %c0_4 = arith.constant 0 : index
    %c0_5 = arith.constant 0 : index
    %9 = vector.load %arg4[%c0_4, %c0_5] : memref<8x1xf32, #tpu.memory_space<vmem>>, vector<8x1xf32>
    tpu.vector_store %arg4[%c0_4, %c0_5], %8 {strides = array<i32>} : memref<8x1xf32, #tpu.memory_space<vmem>>, vector<8x1xf32>,
    return
  }
  func.func @transform_0(%arg0: i32) -> (i32, i32) {
    %c0_i32 = arith.constant 0 : i32
    %c0_i32_0 = arith.constant 0 : i32
    return %arg0, %c0_i32 : i32, i32
  }
  func.func @transform_1(%arg0: i32) -> (i32, i32) {
    %c0_i32 = arith.constant 0 : i32
    %c0_i32_0 = arith.constant 0 : i32
    %c0_i32_1 = arith.constant 0 : i32
    return %c0_i32, %c0_i32_0 : i32, i32
  }
  func.func @transform_2(%arg0: i32) -> i32 {
    %c0_i32 = arith.constant 0 : i32
    %c0_i32_0 = arith.constant 0 : i32
    return %c0_i32 : i32
  }
  func.func @transform_3(%arg0: i32) -> (i32, i32) {
    %c0_i32 = arith.constant 0 : i32
    %c0_i32_0 = arith.constant 0 : i32
    return %arg0, %c0_i32 : i32, i32
  }
}

</mosaic_0001>

<bundles_post_ra>
// kernel: tpu_custom_call.1
= control target key start
LH: loop header
LB: loop body
LE: loop exit
PB: predicated region body
PF: predicated region fallthrough
CT: control target
= control target key end

     0   :  { %9 = vsyncpa [#allocation4], 0  ;;  %s77_s15 = smov [#allocation3]   ;;  %s110_s0 = inlined_call_operand.hbm [shape: f32[8,32], index: 0, kind: input, shape index: {}]   ;;  %s111_s1 = inlined_call_operand.vmem [shape: f32[1,32], index: 1, kind: input, shape index: {}]   ;;  %s112_s2 = inlined_call_operand.<no memory space> [shape: f32[1], index: 2, kind: input, shape index: {}]   ;;  %s113_s3 = inlined_call_operand.vmem [shape: f32[8,1], index: 3, kind: output, shape index: {}]  }
   0x1   :  { %s15_s14 = sshll.u32 %s110_s0, 4  ;;  %s17_s16 = sshll.u32 %s77_s15, 4  ;;  %s16_s14 = int_to_ptr.hbm [resolvable:$true] %s15_s14  ;;  %s18_s16 = int_to_ptr.vmem [resolvable:$true] %s17_s16 }
   0x2   :  { %20 = dma.hbm_to_vmem [thread:$0]  %s16_s14, 128, %s18_s16, [#allocation4]  }
   0x3   :  { %75 = dma.done.wait [#allocation4], 128  }
   0x4   :  { %76 = vsyncadd [#allocation4], 4294967168  ;;  %v29_v0 = vld [vmem:[#allocation3] sm:$0xff]  ;;  %vm35_vm0 = vcmask 261120   ;;  %v40_v4 = vstv %s112_s2  ;;  %vm42_vm1 = vcmask 7168  }
   0x5   :  { %v50_v1 = vld [vmem:[%s111_s1] ss:$0 sm:$0xff] }
   0x6   :  { %v34_v2 = vmul.f32 %v50_v1, %v29_v0 }
   0x8   :  { %v36_v3 = vsel %vm35_vm0, %v34_v2, 0.0 }
   0x9   :  { %37 = vadd.xlane.f32.xlu0 %v36_v3 }
  0x7c   :  { %v38_v5 = vpop.xlane.xlu0 %37 }
  0x7d   :  { %v41_v6 = vadd.f32 %v40_v4, %v38_v5 }
  0x7f   :  { %43 = vst.msk [vmem:[%s113_s3] sm:$0xff] %vm42_vm1, %v41_v6 }
  0x80   :  { %48 = vsyncpa [#allocation4], 1 }

</bundles_post_ra>
